<compile_context>
chip_gen: v7x
topology: tpu7x:2x2x1
jax: 0.10.0
libtpu: 0.0.40
codegen_flags: <defaults>
</compile_context>

<pallas_src>
import functools

import numpy as np
import jax
import jax.numpy as jnp
from jax.experimental import pallas as pl
from jax.experimental.pallas import tpu as pltpu


# ----------------------------- Pallas kernel -------------------------------

def _hyptube_kernel(x_ref, we_ref, be_ref, wd_ref, bd_ref, o_ref, *, hc, steps):
    # x_ref  : (Cin, tm)                  compute dtype (bf16 or f32)
    # we_ref : (Cenc, Cin)                Cenc = (4*steps + 2)*hc, row-permuted
    # be_ref : (Cenc, 1)                  f32 encoder bias
    # wd_ref : (Rout, steps*hc)           block-diagonal decoder weight
    # bd_ref : (Rout, 1)                  f32 decoder bias (Rout = pad8(steps*Cout))
    # o_ref  : (Rout, tm)                 f32 output tile
    x = x_ref[...]

    # Encoder 1x1 conv == per-pixel matmul over channels (MXU, f32 accumulate),
    # bias added as a broadcast (kept in f32 regardless of weight dtype).
    flow = jnp.dot(we_ref[...], x, preferred_element_type=jnp.float32)
    flow = flow + be_ref[...]                                    # (Cenc, tm) f32

    u = flow[0:hc, :]
    v = flow[hc:2 * hc, :]

    # steps is a small static constant -> unrolled Python loop; all slices are
    # sublane-aligned (hc multiple of 8) static views of `flow`.  Mixing math
    # stays f32 (v5e VPU has no bf16).
    outs = []
    for j in range(steps):
        base = 2 * hc + j * 4 * hc
        a0 = flow[base + 0 * hc: base + 1 * hc, :]
        m0 = flow[base + 1 * hc: base + 2 * hc, :]
        a1 = flow[base + 2 * hc: base + 3 * hc, :]
        m1 = flow[base + 3 * hc: base + 4 * hc, :]
        # output = (0 + a0*u) * (1 + m0*v); output = (output + a1*u) * (1 + m1*v)
        out = (a0 * u) * (1.0 + m0 * v)
        out = (out + a1 * u) * (1.0 + m1 * v)
        outs.append(out)

    # Cast to decoder-weight dtype so the fused block-diagonal decoder matmul
    # runs as a native bf16 MXU op (f32 accumulation), not a promoted f32 one.
    stacked = jnp.concatenate(outs, axis=0).astype(wd_ref.dtype)  # (steps*hc, tm)

    dec = jnp.dot(wd_ref[...], stacked, preferred_element_type=jnp.float32)
    o_ref[...] = (dec + bd_ref[...]).astype(o_ref.dtype)


# --------------------------------- wrapper ----------------------------------

def stepwise_hyptube_forward(x_nchw, we_pt, be_pt, wd_pt, bd_pt, *,
                             hidden_channels, steps, tm=4096,
                             compute_dtype=jnp.bfloat16):
    """Runs StepwiseHypTube.forward with 1x1-conv encoder/decoder.

    x_nchw : (b, Cin, w, h)    float32
    we_pt  : (Cenc, Cin)       PyTorch Conv2d(Cin, Cenc, 1) weight (k=1 squeezed)
    be_pt  : (Cenc,)
    wd_pt  : (Cout, hc)
    bd_pt  : (Cout,)
    returns (b, steps, Cout, w, h) float32

    compute_dtype: bf16 by default (native MXU path on all generations;
    accumulation stays f32).  Use jnp.float32 for tight-tolerance checks.
    """
    hc = hidden_channels
    b, cin, w, h = x_nchw.shape
    cenc = (4 * steps + 2) * hc
    cout = wd_pt.shape[0]
    assert we_pt.shape == (cenc, cin)

    # --- glue: reorder encoder output channels to the kernel-friendly layout.
    # kernel row (k, j, ix, iy) = 2*hc + j*4*hc + (2*ix+iy)*hc + k
    # pytorch chan (k, j, ix, iy) = 2*hc + ((k*steps + j)*2 + ix)*2 + iy
    perm = np.zeros(cenc, dtype=np.int32)
    perm[0:2 * hc] = np.arange(2 * hc)  # u, v stay put
    for j in range(steps):
        for ix in range(2):
            for iy in range(2):
                for k in range(hc):
                    krow = 2 * hc + j * 4 * hc + (2 * ix + iy) * hc + k
                    pchan = 2 * hc + ((k * steps + j) * 2 + ix) * 2 + iy
                    perm[krow] = pchan

    we_full = jnp.asarray(we_pt)[perm, :].astype(compute_dtype)        # (Cenc, Cin)
    be_full = jnp.asarray(be_pt)[perm][:, None].astype(jnp.float32)    # (Cenc, 1)

    # Block-diagonal decoder weight; pad output rows to a multiple of 8 so the
    # store stays a full unmasked sublane group.
    rout = steps * cout
    rout_pad = ((rout + 7) // 8) * 8
    wd = jnp.asarray(wd_pt)
    wd_full = jnp.kron(jnp.eye(steps, dtype=wd.dtype), wd)             # (rout, steps*hc)
    bd_full = jnp.tile(jnp.asarray(bd_pt), steps)                      # (rout,)
    if rout_pad != rout:
        wd_full = jnp.pad(wd_full, ((0, rout_pad - rout), (0, 0)))
        bd_full = jnp.pad(bd_full, (0, rout_pad - rout))
    wd_full = wd_full.astype(compute_dtype)
    bd_full = bd_full[:, None].astype(jnp.float32)

    # --- batch-major pixel layout: (b, Cin, w*h); no transpose, free reshape.
    wh = w * h
    wh128 = ((wh + 127) // 128) * 128
    tm_eff = max(128, (min(tm, wh128) // 128) * 128)
    if b * (wh128 // tm_eff) < 2 and wh128 >= 256:
        # keep >= 2 total grid steps so v7x megacore can split the work
        tm_eff = max(128, ((wh128 // 2) // 128) * 128)
    wh_pad = pl.cdiv(wh, tm_eff) * tm_eff

    x_bcn = x_nchw.reshape(b, cin, wh)
    if wh_pad != wh:
        x_bcn = jnp.pad(x_bcn, ((0, 0), (0, 0), (0, wh_pad - wh)))
    x_bcn = x_bcn.astype(compute_dtype)

    kernel = functools.partial(_hyptube_kernel, hc=hc, steps=steps)

    # Rough VMEM budget (bytes) with headroom; floor 16 MiB (v5e scoped
    # default), cap 32 MiB (v7x scoped default -- actual need is far below it).
    bpe_w = jnp.dtype(compute_dtype).itemsize
    vmem_est = (
        2 * cin * tm_eff * bpe_w                       # x, double-buffered
        + cenc * cin * bpe_w + cenc * 4                # encoder weight + bias
        + rout_pad * steps * hc * bpe_w + rout_pad * 4  # decoder weight + bias
        + 2 * rout_pad * tm_eff * 4                    # output, double-buffered
        + cenc * tm_eff * 4                            # flow intermediate
        + steps * hc * tm_eff * (4 + bpe_w))           # stacked (+ cast copy)
    vmem_limit = int(min(max(4 * vmem_est, 16 * 1024 * 1024), 32 * 1024 * 1024))

    out_flat = pl.pallas_call(
        kernel,
        out_shape=jax.ShapeDtypeStruct((b, rout_pad, wh_pad), jnp.float32),
        grid_spec=pltpu.PrefetchScalarGridSpec(
            num_scalar_prefetch=0,
            grid=(b, wh_pad // tm_eff),
            in_specs=[
                pl.BlockSpec((pl.Squeezed(), cin, tm_eff),
                             lambda bi, i: (bi, 0, i)),                  # x tile
                pl.BlockSpec((cenc, cin), lambda bi, i: (0, 0)),         # enc W
                pl.BlockSpec((cenc, 1), lambda bi, i: (0, 0)),           # enc b
                pl.BlockSpec((rout_pad, steps * hc), lambda bi, i: (0, 0)),  # dec W
                pl.BlockSpec((rout_pad, 1), lambda bi, i: (0, 0)),       # dec b
            ],
            out_specs=pl.BlockSpec((pl.Squeezed(), rout_pad, tm_eff),
                                   lambda bi, i: (bi, 0, i)),
        ),
        compiler_params=pltpu.CompilerParams(
            dimension_semantics=("parallel", "parallel"),
            vmem_limit_bytes=vmem_limit),
    )(x_bcn, we_full, be_full, wd_full, bd_full)

    # --- glue: (b, rout_pad, wh_pad) -> (b, steps, Cout, w, h); copy-free when
    # no padding was added, cheap slice otherwise.
    out = out_flat[:, :rout, :wh].reshape(b, steps, cout, w, h)
    return out


# --------------------------- pure-JAX reference ----------------------------

def _reference_forward(x_nchw, we_pt, be_pt, wd_pt, bd_pt, *, hc, steps):
    """Direct transcription of the PyTorch forward (1x1-conv enc/dec)."""
    b, c, w, h = x_nchw.shape
    cout = wd_pt.shape[0]
    flow = jnp.einsum('oc,bcwh->bowh', we_pt, x_nchw) + be_pt[None, :, None, None]
    u = flow[:, 0:hc]
    v = flow[:, hc:2 * hc]
    rest = flow[:, 2 * hc:].reshape(b, hc, steps, 2, 2, w, h)
    results = []
    for j in range(steps):
        out = jnp.zeros((b, hc, w, h), jnp.float32)
        for ix in range(2):
            a = rest[:, :, j, ix, 0]
            m = rest[:, :, j, ix, 1]
            out = (out + a * u) * (1.0 + m * v)
        dec = jnp.einsum('oc,bcwh->bowh', wd_pt, out) + bd_pt[None, :, None, None]
        results.append(dec)
    cat = jnp.concatenate(results, axis=1)          # (b, steps*Cout, w, h)
    return cat.reshape(b, steps, cout, w, h)


# --------------------------------- main -------------------------------------

if __name__ == "__main__":
    b, cin, w, h = 2, 4, 16, 16
    hc, cout, steps = 32, 4, 2
    cenc = (4 * steps + 2) * hc

    key = jax.random.PRNGKey(0)
    k_x, k_we, k_be, k_wd, k_bd = jax.random.split(key, 5)

    x = jax.random.normal(k_x, (b, cin, w, h), jnp.float32)
    we = jax.random.normal(k_we, (cenc, cin), jnp.float32) * 0.1   # enc 1x1 conv
    be = jax.random.normal(k_be, (cenc,), jnp.float32) * 0.1
    wd = jax.random.normal(k_wd, (cout, hc), jnp.float32) * 0.1    # dec 1x1 conv
    bd = jax.random.normal(k_bd, (cout,), jnp.float32) * 0.1

    ref = _reference_forward(x, we, be, wd, bd, hc=hc, steps=steps)

    # 1) f32 compute path: exact-semantics check with tight tolerances.
    out_f32 = stepwise_hyptube_forward(x, we, be, wd, bd,
                                       hidden_channels=hc, steps=steps,
                                       compute_dtype=jnp.float32)
    out_f32 = jax.block_until_ready(out_f32)
    np.testing.assert_allclose(np.asarray(out_f32), np.asarray(ref),
                               rtol=1e-4, atol=1e-4)

    # 2) Default fast path (bf16 matmul operands, f32 accumulation/mixing).
    out_bf16 = stepwise_hyptube_forward(x, we, be, wd, bd,
                                        hidden_channels=hc, steps=steps)
    out_bf16 = jax.block_until_ready(out_bf16)
    np.testing.assert_allclose(np.asarray(out_bf16), np.asarray(ref),
                               rtol=3e-2, atol=3e-2)

    assert out_bf16.shape == (b, steps, cout, w, h)
    print("KERNEL_OK")
</pallas_src>

<mosaic_0001>
module attributes {stable_mosaic.version = 11 : i64} {
  func.func @_hyptube_kernel(%arg0: i32, %arg1: i32, %arg2: memref<1x4x256xf32, #tpu.memory_space<vmem>>, %arg3: memref<320x4xf32, #tpu.memory_space<vmem>>, %arg4: memref<320x1xf32, #tpu.memory_space<vmem>>, %arg5: memref<8x64xf32, #tpu.memory_space<vmem>>, %arg6: memref<8x1xf32, #tpu.memory_space<vmem>>, %arg7: memref<1x8x256xf32, #tpu.memory_space<vmem>>) attributes {dimension_semantics = [#tpu.dimension_semantics<parallel>, #tpu.dimension_semantics<parallel>], iteration_bounds = array<i64: 2, 1>, scalar_prefetch = 0 : i64, scratch_operands = 0 : i64, tpu.core_type = #tpu.core_type<tc>, window_params = [{transform_indices = @transform_0, window_bounds = array<i64: 1, 4, 256>}, {pipeline_mode = #tpu.pipeline_mode<synchronous>, transform_indices = @transform_1, window_bounds = array<i64: 320, 4>}, {pipeline_mode = #tpu.pipeline_mode<synchronous>, transform_indices = @transform_2, window_bounds = array<i64: 320, 1>}, {pipeline_mode = #tpu.pipeline_mode<synchronous>, transform_indices = @transform_3, window_bounds = array<i64: 8, 64>}, {pipeline_mode = #tpu.pipeline_mode<synchronous>, transform_indices = @transform_4, window_bounds = array<i64: 8, 1>}, {transform_indices = @transform_5, window_bounds = array<i64: 1, 8, 256>}]} {
    %c0 = arith.constant 0 : index
    %c0_0 = arith.constant 0 : index
    %c0_1 = arith.constant 0 : index
    %0 = vector.load %arg2[%c0, %c0_0, %c0_1] : memref<1x4x256xf32, #tpu.memory_space<vmem>>, vector<1x4x256xf32>
    %1 = vector.shape_cast %0 : vector<1x4x256xf32> to vector<4x256xf32>
    %c0_2 = arith.constant 0 : index
    %c0_3 = arith.constant 0 : index
    %2 = vector.load %arg3[%c0_2, %c0_3] : memref<320x4xf32, #tpu.memory_space<vmem>>, vector<320x4xf32>
    %cst = arith.constant dense<0.000000e+00> : vector<320x256xf32>
    %3 = tpu.matmul %2, %1, %cst {dimension_numbers = #tpu.dot_dimension_numbers<[1], [0], [0], [1], [0, 0, 1, 1], [], []>} : vector<320x4xf32>, vector<4x256xf32>, vector<320x256xf32> -> vector<320x256xf32>
    %c0_4 = arith.constant 0 : index
    %c0_5 = arith.constant 0 : index
    %4 = vector.load %arg4[%c0_4, %c0_5] : memref<320x1xf32, #tpu.memory_space<vmem>>, vector<320x1xf32>
    %5 = vector.broadcast %4 : vector<320x1xf32> to vector<320x256xf32>
    %6 = arith.addf %3, %5 : vector<320x256xf32>
    %7 = vector.extract_strided_slice %6 {offsets = [0, 0], sizes = [32, 256], strides = [1, 1]} : vector<320x256xf32> to vector<32x256xf32>
    %8 = vector.extract_strided_slice %6 {offsets = [32, 0], sizes = [32, 256], strides = [1, 1]} : vector<320x256xf32> to vector<32x256xf32>
    %9 = vector.extract_strided_slice %6 {offsets = [64, 0], sizes = [32, 256], strides = [1, 1]} : vector<320x256xf32> to vector<32x256xf32>
    %10 = vector.extract_strided_slice %6 {offsets = [96, 0], sizes = [32, 256], strides = [1, 1]} : vector<320x256xf32> to vector<32x256xf32>
    %11 = vector.extract_strided_slice %6 {offsets = [128, 0], sizes = [32, 256], strides = [1, 1]} : vector<320x256xf32> to vector<32x256xf32>
    %12 = vector.extract_strided_slice %6 {offsets = [160, 0], sizes = [32, 256], strides = [1, 1]} : vector<320x256xf32> to vector<32x256xf32>
    %13 = arith.mulf %9, %7 : vector<32x256xf32>
    %14 = arith.mulf %10, %8 : vector<32x256xf32>
    %cst_6 = arith.constant 1.000000e+00 : f32
    %15 = vector.broadcast %cst_6 : f32 to vector<32x256xf32>
    %16 = arith.addf %15, %14 : vector<32x256xf32>
    %17 = arith.mulf %13, %16 : vector<32x256xf32>
    %18 = arith.mulf %11, %7 : vector<32x256xf32>
    %19 = arith.addf %17, %18 : vector<32x256xf32>
    %20 = arith.mulf %12, %8 : vector<32x256xf32>
    %cst_7 = arith.constant 1.000000e+00 : f32
    %21 = vector.broadcast %cst_7 : f32 to vector<32x256xf32>
    %22 = arith.addf %21, %20 : vector<32x256xf32>
    %23 = arith.mulf %19, %22 : vector<32x256xf32>
    %24 = vector.extract_strided_slice %6 {offsets = [192, 0], sizes = [32, 256], strides = [1, 1]} : vector<320x256xf32> to vector<32x256xf32>
    %25 = vector.extract_strided_slice %6 {offsets = [224, 0], sizes = [32, 256], strides = [1, 1]} : vector<320x256xf32> to vector<32x256xf32>
    %26 = vector.extract_strided_slice %6 {offsets = [256, 0], sizes = [32, 256], strides = [1, 1]} : vector<320x256xf32> to vector<32x256xf32>
    %27 = vector.extract_strided_slice %6 {offsets = [288, 0], sizes = [32, 256], strides = [1, 1]} : vector<320x256xf32> to vector<32x256xf32>
    %28 = arith.mulf %24, %7 : vector<32x256xf32>
    %29 = arith.mulf %25, %8 : vector<32x256xf32>
    %cst_8 = arith.constant 1.000000e+00 : f32
    %30 = vector.broadcast %cst_8 : f32 to vector<32x256xf32>
    %31 = arith.addf %30, %29 : vector<32x256xf32>
    %32 = arith.mulf %28, %31 : vector<32x256xf32>
    %33 = arith.mulf %26, %7 : vector<32x256xf32>
    %34 = arith.addf %32, %33 : vector<32x256xf32>
    %35 = arith.mulf %27, %8 : vector<32x256xf32>
    %cst_9 = arith.constant 1.000000e+00 : f32
    %36 = vector.broadcast %cst_9 : f32 to vector<32x256xf32>
    %37 = arith.addf %36, %35 : vector<32x256xf32>
    %38 = arith.mulf %34, %37 : vector<32x256xf32>
    %39 = tpu.concatenate %23, %38 in 0 : vector<32x256xf32>, vector<32x256xf32> -> vector<64x256xf32>
    %c0_10 = arith.constant 0 : index
    %c0_11 = arith.constant 0 : index
    %40 = vector.load %arg5[%c0_10, %c0_11] : memref<8x64xf32, #tpu.memory_space<vmem>>, vector<8x64xf32>
    %cst_12 = arith.constant dense<0.000000e+00> : vector<8x256xf32>
    %41 = tpu.matmul %40, %39, %cst_12 {dimension_numbers = #tpu.dot_dimension_numbers<[1], [0], [0], [1], [0, 0, 1, 1], [], []>} : vector<8x64xf32>, vector<64x256xf32>, vector<8x256xf32> -> vector<8x256xf32>
    %c0_13 = arith.constant 0 : index
    %c0_14 = arith.constant 0 : index
    %42 = vector.load %arg6[%c0_13, %c0_14] : memref<8x1xf32, #tpu.memory_space<vmem>>, vector<8x1xf32>
    %43 = vector.broadcast %42 : vector<8x1xf32> to vector<8x256xf32>
    %44 = arith.addf %41, %43 : vector<8x256xf32>
    %c0_15 = arith.constant 0 : index
    %c0_16 = arith.constant 0 : index
    %c0_17 = arith.constant 0 : index
    %45 = vector.load %arg7[%c0_15, %c0_16, %c0_17] : memref<1x8x256xf32, #tpu.memory_space<vmem>>, vector<1x8x256xf32>
    %46 = vector.shape_cast %45 : vector<1x8x256xf32> to vector<8x256xf32>
    %47 = vector.shape_cast %44 : vector<8x256xf32> to vector<1x8x256xf32>
    tpu.vector_store %arg7[%c0_15, %c0_16, %c0_17], %47 {strides = array<i32>} : memref<1x8x256xf32, #tpu.memory_space<vmem>>, vector<1x8x256xf32>,
    return
  }
  func.func @transform_0(%arg0: i32, %arg1: i32) -> (i32, i32, i32) {
    %c0_i32 = arith.constant 0 : i32
    %c0_i32_0 = arith.constant 0 : i32
    return %arg0, %c0_i32, %arg1 : i32, i32, i32
  }
  func.func @transform_1(%arg0: i32, %arg1: i32) -> (i32, i32) {
    %c0_i32 = arith.constant 0 : i32
    %c0_i32_0 = arith.constant 0 : i32
    %c0_i32_1 = arith.constant 0 : i32
    return %c0_i32, %c0_i32_0 : i32, i32
  }
  func.func @transform_2(%arg0: i32, %arg1: i32) -> (i32, i32) {
    %c0_i32 = arith.constant 0 : i32
    %c0_i32_0 = arith.constant 0 : i32
    %c0_i32_1 = arith.constant 0 : i32
    return %c0_i32, %c0_i32_0 : i32, i32
  }
  func.func @transform_3(%arg0: i32, %arg1: i32) -> (i32, i32) {
    %c0_i32 = arith.constant 0 : i32
    %c0_i32_0 = arith.constant 0 : i32
    %c0_i32_1 = arith.constant 0 : i32
    return %c0_i32, %c0_i32_0 : i32, i32
  }
  func.func @transform_4(%arg0: i32, %arg1: i32) -> (i32, i32) {
    %c0_i32 = arith.constant 0 : i32
    %c0_i32_0 = arith.constant 0 : i32
    %c0_i32_1 = arith.constant 0 : i32
    return %c0_i32, %c0_i32_0 : i32, i32
  }
  func.func @transform_5(%arg0: i32, %arg1: i32) -> (i32, i32, i32) {
    %c0_i32 = arith.constant 0 : i32
    %c0_i32_0 = arith.constant 0 : i32
    return %arg0, %c0_i32, %arg1 : i32, i32, i32
  }
}

</mosaic_0001>

<bundles_post_ra>
// kernel: tpu_custom_call.1
= control target key start
LH: loop header
LB: loop body
LE: loop exit
PB: predicated region body
PF: predicated region fallthrough
CT: control target
= control target key end

     0   :  { %10 = vsyncpa [#allocation3], 0  ;;  %s2323_s0 = inlined_call_operand.vmem [shape: f32[2,4,256], index: 0, kind: input, shape index: {}]   ;;  %s2324_s1 = inlined_call_operand.vmem [shape: f32[320,4], index: 1, kind: input, shape index: {}]   ;;  %s2325_s2 = inlined_call_operand.vmem [shape: f32[320,1], index: 2, kind: input, shape index: {}]   ;;  %s2326_s3 = inlined_call_operand.vmem [shape: f32[8,64], index: 3, kind: input, shape index: {}]   ;;  %s2327_s4 = inlined_call_operand.vmem [shape: f32[8,1], index: 4, kind: input, shape index: {}]   ;;  %s2328_s5 = inlined_call_operand.hbm [shape: f32[2,8,256], index: 5, kind: output, shape index: {}]  }
   0x1   :  { %12 = vsyncpa [#allocation3 + $0x1], 0  ;;  %s1538_s18 = smov 0   ;;  %s1540_s19 = smov 0  }
   0x2   :  { %s1542_s20 = smov 0   ;;  %s1544_s21 = smov 0  }
   0x3   :  { %s1546_s22 = smov 0   ;;  %s1548_s23 = smov 0  }
   0x4 LB: > { %s1289_s24 = sadd.s32 4294967295, %s1503_s23   ;;  %s1290_s25 = sadd.s32 4294967294, %s1503_s23   ;;  %s1503_s23 = sphi %s1548_s23, %s18_s23   ;;  %s1499_s22 = sphi %s1546_s22, %s2344_s22   ;;  %s1495_s21 = sphi %s1544_s21, %s2343_s21   ;;  %s1491_s20 = sphi %s1542_s20, %s2342_s20   ;;  %s1487_s19 = sphi %s1540_s19, %s2341_s19   ;;  %s1483_s18 = sphi %s1538_s18, %s2340_s18  }
   0x5   : > { %s30_s26 = sadd.s32 1, %s1499_s22  ;;  %s151_s27 = sadd.s32 1, %s1491_s20 }
   0x6   : > { %p32_p0 = scmp.ge.s32.totalorder %s30_s26, 2  ;;  %p161_p1 = scmp.ne.s32.totalorder %s1491_s20, %s1487_s19 }
   0x7   : > { %p162_p2 = scmp.eq.s32.totalorder %s1289_s24, 1  ;;  %p167_p3 = scmp.ne.s32.totalorder %s1487_s19, %s1483_s18 }
   0x8   : > { %s2346_s26 = smov (%p32_p0, %s30_s26), 0  ;;  %p168_p5 = scmp.eq.s32.totalorder %s1290_s25, 1 }
   0x9   : > { %p1578_p4 = por %p162_p2, %p161_p1  ;;  %s146_s29 = ssub.s32 %s1499_s22, %s2346_s26 }
   0xa   : > { %p1293_p6 = scmp.ge.s32.totalorder %s1503_s23, 1  ;;  %p149_p7 = scmp.eq.s32.totalorder %s146_s29, 0 }
   0xb   : > { %p1585_p8 = por %p168_p5, %p167_p3  ;;  %p211_p9 = scmp.lt.s32.totalorder %s1503_s23, 3 }
   0xc   : > { %s1591_s6 = scalar_select %p149_p7, %s1491_s20, %s151_s27  }
   0xd   : > { %p212_p10 = pnand %p1293_p6, %p211_p9 }
   0xf   : > { %215 = sbr.rel (%p212_p10) target bundleno = 581 (0x245), region = 40 }
  0x16   : > { %p244_p11 = scmp.lt.s32.totalorder %s1495_s21, 1  ;;  %v1505_v0 = vmov 0.0   ;;  %v1506_v1 = vmov 0   ;;  %vm658_vm0 = vcmask 1043456   ;;  %v299_v3 = vld [vmem:[%s2325_s2 + $0x20] sm:$0xff]  ;;  %vm537_vm1 = vcmask 31744  }
  0x17   : > { %727 = vmatprep.mubr.f32.mxu0 %v1505_v0  ;;  %853 = vmatprep.mubr.f32.mxu1 %v1505_v0  ;;  %v307_v5 = vld [vmem:[%s2325_s2 + $0x60] sm:$0xff]  ;;  %v276_v7 = vld [vmem:[%s2324_s1 + $0xa8] sm:$0xff]  ;;  %v277_v11 = vld [vmem:[%s2324_s1 + $0xb0] sm:$0xff]  ;;  %vm1119_vm2 = vcmask 523264   ;;  %s1346_s13 = sshll.u32 %s1495_s21, 8  ;;  %s1507_s27 = smov [#allocation2]  }
  0x18   : > { %s245_s7 = scalar_select %p244_p11, %s1495_s21, 1  ;;  %1422 = vset.pattern.permute.xlu0 %v1506_v1  ;;  %1423 = vset.pattern.permute.xlu1 %v1506_v1  ;;  %v255_v6 = vld [vmem:[%s2324_s1] sm:$0xff]  ;;  %v300_v8 = vld [vmem:[%s2325_s2 + $0x28] sm:$0xff]  ;;  %v257_v14 = vld [vmem:[%s2324_s1 + $0x10] sm:$0xff] }
  0x19   : > { %357 = vperm.xlu0 %1422, %v299_v3   ;;  %397 = vperm.xlu1 %1423, %v307_v5   ;;  %v308_v9 = vld [vmem:[%s2325_s2 + $0x68] sm:$0xff]  ;;  %v295_v12 = vld [vmem:[%s2325_s2] sm:$0xff]  ;;  %v278_v15 = vld [vmem:[%s2324_s1 + $0xb8] sm:$0xff]  ;;  %s2276_s24 = scalar_lea.hbm %s2328_s5, %s1346_s13  ;;  %s1429_s29 = sshll.u32 %s1507_s27, 4  ;;  %s1430_s29 = int_to_ptr.vmem [resolvable:$false] %s1429_s29 }
  0x1a   : > { %s1345_s8 = sshll.u32 %s245_s7, 3  ;;  %v256_v10 = vld [vmem:[%s2324_s1 + $0x8] sm:$0xff]  ;;  %v303_v16 = vld [vmem:[%s2325_s2 + $0x40] sm:$0xff]  ;;  %v258_v18 = vld [vmem:[%s2324_s1 + $0x18] sm:$0xff]  ;;  %s1431_s7 = scalar_lea.vmem %s1430_s29, 512 }
  0x1b   : > { %s251_s11 = scalar_lea.vmem %s2323_s0, %s1345_s8  ;;  %v296_v13 = vld [vmem:[%s2325_s2 + $0x8] sm:$0xff]  ;;  %v279_v19 = vld [vmem:[%s2324_s1 + $0xc0] sm:$0xff]  ;;  %v301_v20 = vld [vmem:[%s2325_s2 + $0x30] sm:$0xff] }
  0x1c   : > { %v254_v2 = vld [vmem:[%s251_s11] sm:$0xff]  ;;  %v304_v17 = vld [vmem:[%s2325_s2 + $0x48] sm:$0xff]  ;;  %v302_v21 = vld [vmem:[%s2325_s2 + $0x38] sm:$0xff]  ;;  %s240_s11 = sand.u32 1, %s1487_s19  }
  0x1d   : > { %v536_v4 = vcombine.high %v254_v2, %v254_v2  ;;  %362 = vperm.xlu0 %1422, %v300_v8   ;;  %402 = vperm.xlu1 %1423, %v308_v9   ;;  %v259_v22 = vld [vmem:[%s2324_s1 + $0x20] sm:$0xff]  ;;  %v280_v23 = vld [vmem:[%s2324_s1 + $0xc8] sm:$0xff]  ;;  %v309_v24 = vld [vmem:[%s2325_s2 + $0x70] sm:$0xff]  ;;  %s1294_s12 = sshll.u32 %s240_s11, 4  ;;  %s1197_s21 = scalar_lea.sflag [#allocation3], %s240_s11 }
  0x1e   : > { %v310_v25 = vld [vmem:[%s2325_s2 + $0x78] sm:$0xff]  ;;  %v260_v26 = vld [vmem:[%s2324_s1 + $0x28] sm:$0xff]  ;;  %v281_v27 = vld [vmem:[%s2324_s1 + $0xd0] sm:$0xff]  ;;  %s242_s14 = scalar_lea.vmem [#allocation2], %s1294_s12 }
  0x1f   : > { %1297 = vmatprep.subr.msk.mxu0 %vm658_vm0, %v536_v4  ;;  %1363 = vmatprep.subr.msk.mxu1 %vm658_vm0, %v536_v4  ;;  %v311_v28 = vld [vmem:[%s2325_s2 + $0x80] sm:$0xff]  ;;  %v312_v29 = vld [vmem:[%s2325_s2 + $0x88] sm:$0xff]  ;;  %v261_v30 = vld [vmem:[%s2324_s1 + $0x30] sm:$0xff]  ;;  %s1213_s15 = sshll.u32 %s242_s14, 4  ;;  %s2278_s15 = int_to_ptr.vmem [resolvable:$true] %s1213_s15 }
  0x20   : > { %1298 = vmatpush1.msk.msra.mxu0 %vm658_vm0, %v254_v2  ;;  %1364 = vmatpush1.msk.msra.mxu1 %vm658_vm0, %v254_v2  ;;  %v282_v31 = vld [vmem:[%s2324_s1 + $0xd8] sm:$0xff]  ;;  %v315_v32 = vld [vmem:[%s2325_s2 + $0xa0] sm:$0xff]  ;;  %v316_v33 = vld [vmem:[%s2325_s2 + $0xa8] sm:$0xff]  ;;  %s1425_s25 = scalar_lea.vmem %s2278_s15, 256  ;;  %p1432_p1 = scmp.lt.s32.totalorder %s2278_s15, %s1430_s29 }
  0x21   : > { %1299 = vmatmul.mubr.msk.f32.vlgmr.msra.gmra.mrb[0].mxu0 %vm537_vm1, %v255_v6  ;;  %1320 = vmatmul.mubr.msk.f32.vlgmr.msra.gmra.mrb[0].mxu1 %vm537_vm1, %v276_v7  ;;  %v262_v34 = vld [vmem:[%s2324_s1 + $0x38] sm:$0xff]  ;;  %v283_v35 = vld [vmem:[%s2324_s1 + $0xe0] sm:$0xff]  ;;  %v297_v36 = vld [vmem:[%s2325_s2 + $0x10] sm:$0xff]  ;;  %p1426_p12 = scmp.ne.s32.totalorder %s2278_s15, %s1425_s25  ;;  %p1433_p2 = scmp.lt.s32.totalorder %s1431_s7, %s1425_s25 }
  0x22   : > { %733 = vmatprep.mubr.f32.mxu0 %v1505_v0  ;;  %859 = vmatprep.mubr.f32.mxu1 %v1505_v0  ;;  %v298_v37 = vld [vmem:[%s2325_s2 + $0x18] sm:$0xff]  ;;  %v263_v38 = vld [vmem:[%s2324_s1 + $0x40] sm:$0xff]  ;;  %v284_v39 = vld [vmem:[%s2324_s1 + $0xe8] sm:$0xff] }
  0x23   : > { %337 = vperm.xlu0 %1422, %v295_v12   ;;  %342 = vperm.xlu1 %1423, %v296_v13   ;;  %v305_v40 = vld [vmem:[%s2325_s2 + $0x50] sm:$0xff]  ;;  %v306_v41 = vld [vmem:[%s2325_s2 + $0x58] sm:$0xff]  ;;  %v264_v42 = vld [vmem:[%s2324_s1 + $0x48] sm:$0xff]  ;;  %p1427_p13 = pnand %p1426_p12, %p1578_p4  ;;  %p1434_p3 = por %p1433_p2, %p1432_p1 }
  0x24   : > { %v285_v43 = vld [vmem:[%s2324_s1 + $0xf0] sm:$0xff]  ;;  %v314_v45 = vld [vmem:[%s2325_s2 + $0x98] sm:$0xff]  ;;  %v287_v51 = vld [vmem:[%s2324_s1 + $0x100] sm:$0xff] }
  0x25   : > { %1300 = vmatmul.mubr.msk.f32.gmra.mrb[2].mxu0 %vm537_vm1, %v256_v10  ;;  %1321 = vmatmul.mubr.msk.f32.gmra.mrb[2].mxu1 %vm537_vm1, %v277_v11  ;;  %v313_v44 = vld [vmem:[%s2325_s2 + $0x90] sm:$0xff]  ;;  %v286_v47 = vld [vmem:[%s2324_s1 + $0xf8] sm:$0xff]  ;;  %v323_v52 = vld [vmem:[%s2325_s2 + $0xe0] sm:$0xff]  ;;  %p1428_p0 = pneg %p1427_p13 }
  0x26   : > { %739 = vmatprep.mubr.f32.mxu0 %v1505_v0  ;;  %865 = vmatprep.mubr.f32.mxu1 %v1505_v0  ;;  %v265_v46 = vld [vmem:[%s2324_s1 + $0x50] sm:$0xff]  ;;  %v318_v49 = vld [vmem:[%s2325_s2 + $0xb8] sm:$0xff]  ;;  %v324_v53 = vld [vmem:[%s2325_s2 + $0xe8] sm:$0xff] }
  0x27   : > { %377 = vperm.xlu0 %1422, %v303_v16   ;;  %382 = vperm.xlu1 %1423, %v304_v17   ;;  %v317_v48 = vld [vmem:[%s2325_s2 + $0xb0] sm:$0xff]  ;;  %v266_v50 = vld [vmem:[%s2324_s1 + $0x58] sm:$0xff]  ;;  %v267_v54 = vld [vmem:[%s2324_s1 + $0x60] sm:$0xff]  ;;  %p1435_p5 = pnand %p1434_p3, %p1428_p0 }
  0x28   : > { %v288_v55 = vld [vmem:[%s2324_s1 + $0x108] sm:$0xff]  ;;  %v319_v56 = vld [vmem:[%s2325_s2 + $0xc0] sm:$0xff]  ;;  %v289_v59 = vld [vmem:[%s2324_s1 + $0x110] sm:$0xff] }
  0x29   : > { %1301 = vmatmul.mubr.msk.f32.gmra.mrb[4].mxu0 %vm537_vm1, %v257_v14  ;;  %1322 = vmatmul.mubr.msk.f32.gmra.mrb[4].mxu1 %vm537_vm1, %v278_v15  ;;  %v320_v57 = vld [vmem:[%s2325_s2 + $0xc8] sm:$0xff]  ;;  %v325_v60 = vld [vmem:[%s2325_s2 + $0xf0] sm:$0xff]  ;;  %v326_v61 = vld [vmem:[%s2325_s2 + $0xf8] sm:$0xff] }
  0x2a   : > { %745 = vmatprep.mubr.f32.mxu0 %v1505_v0  ;;  %871 = vmatprep.mubr.f32.mxu1 %v1505_v0  ;;  %v268_v58 = vld [vmem:[%s2324_s1 + $0x68] sm:$0xff]  ;;  %v269_v62 = vld [vmem:[%s2324_s1 + $0x70] sm:$0xff]  ;;  %v290_v63 = vld [vmem:[%s2324_s1 + $0x118] sm:$0xff] }
  0x2b   : > { %367 = vperm.xlu0 %1422, %v301_v20   ;;  %372 = vperm.xlu1 %1423, %v302_v21   ;;  %v327_v1 = vld [vmem:[%s2325_s2 + $0x100] sm:$0xff]  ;;  %v328_v2 = vld [vmem:[%s2325_s2 + $0x108] sm:$0xff]  ;;  %v270_v3 = vld [vmem:[%s2324_s1 + $0x78] sm:$0xff] }
  0x2c   : > { %v291_v4 = vld [vmem:[%s2324_s1 + $0x120] sm:$0xff]  ;;  %v332_v6 = vld [vmem:[%s2325_s2 + $0x128] sm:$0xff]  ;;  %v321_v9 = vld [vmem:[%s2325_s2 + $0xd0] sm:$0xff] }
  0x2d   : > { %1302 = vmatmul.mubr.msk.f32.gmra.mrb[6].mxu0 %vm537_vm1, %v258_v18  ;;  %1323 = vmatmul.mubr.msk.f32.gmra.mrb[6].mxu1 %vm537_vm1, %v279_v19  ;;  %v331_v5 = vld [vmem:[%s2325_s2 + $0x120] sm:$0xff]  ;;  %v292_v8 = vld [vmem:[%s2324_s1 + $0x128] sm:$0xff]  ;;  %v322_v10 = vld [vmem:[%s2325_s2 + $0xd8] sm:$0xff] }
  0x2e   : > { %751 = vmatprep.mubr.f32.mxu0 %v1505_v0  ;;  %877 = vmatprep.mubr.f32.mxu1 %v1505_v0  ;;  %v271_v7 = vld [vmem:[%s2324_s1 + $0x80] sm:$0xff]  ;;  %v272_v11 = vld [vmem:[%s2324_s1 + $0x88] sm:$0xff]  ;;  %v293_v12 = vld [vmem:[%s2324_s1 + $0x130] sm:$0xff] }
  0x2f   : > { %407 = vperm.xlu0 %1422, %v309_v24   ;;  %412 = vperm.xlu1 %1423, %v310_v25   ;;  %v329_v13 = vld [vmem:[%s2325_s2 + $0x110] sm:$0xff]  ;;  %v330_v14 = vld [vmem:[%s2325_s2 + $0x118] sm:$0xff]  ;;  %v1113_v20 = vld [vmem:[%s2327_s4] sm:$0xff] }
  0x30   : > { %v273_v15 = vld [vmem:[%s2324_s1 + $0x90] sm:$0xff]  ;;  %v294_v16 = vld [vmem:[%s2324_s1 + $0x138] sm:$0xff]  ;;  %v275_v21 = vld [vmem:[%s2324_s1 + $0xa0] sm:$0xff] }
  0x31   : > { %1303 = vmatmul.mubr.msk.f32.gmra.mrb[8].mxu0 %vm537_vm1, %v259_v22  ;;  %1324 = vmatmul.mubr.msk.f32.gmra.mrb[8].mxu1 %vm537_vm1, %v280_v23  ;;  %v333_v17 = vld [vmem:[%s2325_s2 + $0x130] sm:$0xff]  ;;  %v334_v18 = vld [vmem:[%s2325_s2 + $0x138] sm:$0xff] }
  0x32   : > { %757 = vmatprep.mubr.f32.mxu0 %v1505_v0  ;;  %883 = vmatprep.mubr.f32.mxu1 %v1505_v0  ;;  %v274_v19 = vld [vmem:[%s2324_s1 + $0x98] sm:$0xff] }
  0x33   : > { %417 = vperm.xlu0 %1422, %v311_v28   ;;  %422 = vperm.xlu1 %1423, %v312_v29  }
  0x35   : > { %1304 = vmatmul.mubr.msk.f32.gmra.mrb[10].mxu0 %vm537_vm1, %v260_v26  ;;  %1325 = vmatmul.mubr.msk.f32.gmra.mrb[10].mxu1 %vm537_vm1, %v281_v27 }
  0x36   : > { %763 = vmatprep.mubr.f32.mxu0 %v1505_v0  ;;  %889 = vmatprep.mubr.f32.mxu1 %v1505_v0 }
  0x37   : > { %437 = vperm.xlu0 %1422, %v315_v32   ;;  %442 = vperm.xlu1 %1423, %v316_v33  }
  0x39   : > { %1305 = vmatmul.mubr.msk.f32.gmra.mrb[12].mxu0 %vm537_vm1, %v261_v30  ;;  %1326 = vmatmul.mubr.msk.f32.gmra.mrb[12].mxu1 %vm537_vm1, %v282_v31 }
  0x3a   : > { %769 = vmatprep.mubr.f32.mxu0 %v1505_v0  ;;  %895 = vmatprep.mubr.f32.mxu1 %v1505_v0 }
  0x3b   : > { %347 = vperm.xlu0 %1422, %v297_v36   ;;  %352 = vperm.xlu1 %1423, %v298_v37  }
  0x3d   : > { %1306 = vmatmul.mubr.msk.f32.gmra.mrb[14].mxu0 %vm537_vm1, %v262_v34  ;;  %1327 = vmatmul.mubr.msk.f32.gmra.mrb[14].mxu1 %vm537_vm1, %v283_v35 }
  0x3e   : > { %775 = vmatprep.mubr.f32.mxu0 %v1505_v0  ;;  %901 = vmatprep.mubr.f32.mxu1 %v1505_v0 }
  0x3f   : > { %387 = vperm.xlu0 %1422, %v305_v40   ;;  %392 = vperm.xlu1 %1423, %v306_v41  }
  0x41   : > { %1307 = vmatmul.mubr.msk.f32.gmra.mrb[16].mxu0 %vm537_vm1, %v263_v38  ;;  %1328 = vmatmul.mubr.msk.f32.gmra.mrb[16].mxu1 %vm537_vm1, %v284_v39 }
  0x42   : > { %781 = vmatprep.mubr.f32.mxu0 %v1505_v0  ;;  %907 = vmatprep.mubr.f32.mxu1 %v1505_v0 }
  0x43   : > { %427 = vperm.xlu0 %1422, %v313_v44   ;;  %432 = vperm.xlu1 %1423, %v314_v45  }
  0x45   : > { %1308 = vmatmul.mubr.msk.f32.gmra.mrb[18].mxu0 %vm537_vm1, %v264_v42  ;;  %1329 = vmatmul.mubr.msk.f32.gmra.mrb[18].mxu1 %vm537_vm1, %v285_v43 }
  0x46   : > { %787 = vmatprep.mubr.f32.mxu0 %v1505_v0  ;;  %913 = vmatprep.mubr.f32.mxu1 %v1505_v0 }
  0x47   : > { %447 = vperm.xlu0 %1422, %v317_v48   ;;  %452 = vperm.xlu1 %1423, %v318_v49  }
  0x49   : > { %1309 = vmatmul.mubr.msk.f32.gmra.mrb[20].mxu0 %vm537_vm1, %v265_v46  ;;  %1330 = vmatmul.mubr.msk.f32.gmra.mrb[20].mxu1 %vm537_vm1, %v286_v47 }
  0x4a   : > { %793 = vmatprep.mubr.f32.mxu0 %v1505_v0  ;;  %919 = vmatprep.mubr.f32.mxu1 %v1505_v0 }
  0x4b   : > { %477 = vperm.xlu0 %1422, %v323_v52   ;;  %482 = vperm.xlu1 %1423, %v324_v53  }
  0x4d   : > { %1310 = vmatmul.mubr.msk.f32.gmra.mrb[22].mxu0 %vm537_vm1, %v266_v50  ;;  %1331 = vmatmul.mubr.msk.f32.gmra.mrb[22].mxu1 %vm537_vm1, %v287_v51 }
  0x4e   : > { %799 = vmatprep.mubr.f32.mxu0 %v1505_v0  ;;  %925 = vmatprep.mubr.f32.mxu1 %v1505_v0 }
  0x4f   : > { %457 = vperm.xlu0 %1422, %v319_v56   ;;  %462 = vperm.xlu1 %1423, %v320_v57  }
  0x51   : > { %1311 = vmatmul.mubr.msk.f32.gmra.mrb[24].mxu0 %vm537_vm1, %v267_v54  ;;  %1332 = vmatmul.mubr.msk.f32.gmra.mrb[24].mxu1 %vm537_vm1, %v288_v55 }
  0x52   : > { %805 = vmatprep.mubr.f32.mxu0 %v1505_v0  ;;  %931 = vmatprep.mubr.f32.mxu1 %v1505_v0 }
  0x53   : > { %487 = vperm.xlu0 %1422, %v325_v60   ;;  %492 = vperm.xlu1 %1423, %v326_v61  }
  0x55   : > { %1312 = vmatmul.mubr.msk.f32.gmra.mrb[26].mxu0 %vm537_vm1, %v268_v58  ;;  %1333 = vmatmul.mubr.msk.f32.gmra.mrb[26].mxu1 %vm537_vm1, %v289_v59 }
  0x56   : > { %811 = vmatprep.mubr.f32.mxu0 %v1505_v0  ;;  %937 = vmatprep.mubr.f32.mxu1 %v1505_v0 }
  0x57   : > { %497 = vperm.xlu0 %1422, %v327_v1   ;;  %502 = vperm.xlu1 %1423, %v328_v2  }
  0x59   : > { %1313 = vmatmul.mubr.msk.f32.gmra.mrb[28].mxu0 %vm537_vm1, %v269_v62  ;;  %1334 = vmatmul.mubr.msk.f32.gmra.mrb[28].mxu1 %vm537_vm1, %v290_v63 }
  0x5a   : > { %817 = vmatprep.mubr.f32.mxu0 %v1505_v0  ;;  %943 = vmatprep.mubr.f32.mxu1 %v1505_v0 }
  0x5b   : > { %517 = vperm.xlu0 %1422, %v331_v5   ;;  %522 = vperm.xlu1 %1423, %v332_v6  }
  0x5d   : > { %1314 = vmatmul.mubr.msk.f32.gmra.mrb[30].mxu0 %vm537_vm1, %v270_v3  ;;  %1335 = vmatmul.mubr.msk.f32.gmra.mrb[30].mxu1 %vm537_vm1, %v291_v4 }
  0x5e   : > { %823 = vmatprep.mubr.f32.mxu0 %v1505_v0  ;;  %949 = vmatprep.mubr.f32.mxu1 %v1505_v0 }
  0x5f   : > { %467 = vperm.xlu0 %1422, %v321_v9   ;;  %472 = vperm.xlu1 %1423, %v322_v10  }
  0x61   : > { %1315 = vmatmul.mubr.msk.f32.gmra.mrb[32].mxu0 %vm537_vm1, %v271_v7  ;;  %1336 = vmatmul.mubr.msk.f32.gmra.mrb[32].mxu1 %vm537_vm1, %v292_v8 }
  0x62   : > { %829 = vmatprep.mubr.f32.mxu0 %v1505_v0  ;;  %955 = vmatprep.mubr.f32.mxu1 %v1505_v0 }
  0x63   : > { %507 = vperm.xlu0 %1422, %v329_v13   ;;  %512 = vperm.xlu1 %1423, %v330_v14  }
  0x65   : > { %1316 = vmatmul.mubr.msk.f32.gmra.mrb[34].mxu0 %vm537_vm1, %v272_v11  ;;  %1337 = vmatmul.mubr.msk.f32.gmra.mrb[34].mxu1 %vm537_vm1, %v293_v12 }
  0x66   : > { %835 = vmatprep.mubr.f32.mxu0 %v1505_v0  ;;  %961 = vmatprep.mubr.f32.mxu1 %v1505_v0 }
  0x67   : > { %527 = vperm.xlu0 %1422, %v333_v17   ;;  %532 = vperm.xlu1 %1423, %v334_v18  }
  0x69   : > { %1317 = vmatmul.mubr.msk.f32.gmra.mrb[36].mxu0 %vm537_vm1, %v273_v15  ;;  %1338 = vmatmul.mubr.msk.f32.gmra.mrb[36].mxu1 %vm537_vm1, %v294_v16 }
  0x6a   : > { %841 = vmatprep.mubr.f32.mxu0 %v1505_v0  ;;  %1187 = vmatprep.mubr.f32.mxu1 %v1505_v0 }
  0x6b   : > { %1116 = vperm.xlu0 %1422, %v1113_v20  }
  0x6d   : > { %1318 = vmatmul.mubr.msk.f32.gmra.mrb[38].mxu0 %vm537_vm1, %v274_v19 }
  0x6e   : > { %847 = vmatprep.mubr.f32.mxu0 %v1505_v0 }
  0x71   : > { %1319 = vmatmul.mubr.msk.f32.gmra.mrb[40].mxu0 %vm537_vm1, %v275_v21 }
  0x98   : > { %v1922_v22 = vpop.permute.xlu0 %357  ;;  %v1924_v23 = vpop.permute.xlu1 %397 }
  0x9c   : > { %v1926_v24 = vpop.permute.xlu0 %362  ;;  %v1928_v25 = vpop.permute.xlu1 %402 }
  0xa2   : > { %v338_v26 = vpop.permute.xlu0 %337  ;;  %v343_v27 = vpop.permute.xlu1 %342 }
  0xa6   : > { %v1930_v28 = vpop.permute.xlu0 %377  ;;  %v1932_v0 = vpop.permute.xlu1 %382 }
  0xaa   : > { %v1934_v29 = vpop.permute.xlu0 %367  ;;  %v1936_v30 = vpop.permute.xlu1 %372 }
  0xae   : > { %v1938_v31 = vpop.permute.xlu0 %407  ;;  %v1940_v32 = vpop.permute.xlu1 %412 }
  0xb2   : > { %v1942_v33 = vpop.permute.xlu0 %417  ;;  %v1944_v34 = vpop.permute.xlu1 %422 }
  0xb6   : > { %v1946_v35 = vpop.permute.xlu0 %437  ;;  %v443_v36 = vpop.permute.xlu1 %442 }
  0xb7   : > { %2332 = vst [vmem:[#allocation5_spill] sm:$0xff] %v1946_v35 }
  0xba   : > { %v348_v37 = vpop.permute.xlu0 %347  ;;  %v1948_v38 = vpop.permute.xlu1 %352 }
  0xbe   : > { %v1950_v39 = vpop.permute.xlu0 %387  ;;  %v1952_v40 = vpop.permute.xlu1 %392 }
  0xc2   : > { %v1954_v41 = vpop.permute.xlu0 %427  ;;  %v1956_v42 = vpop.permute.xlu1 %432 }
  0xc6   : > { %v1958_v43 = vpop.permute.xlu0 %447  ;;  %v1960_v44 = vpop.permute.xlu1 %452 }
  0xca   : > { %v1962_v45 = vpop.permute.xlu0 %477  ;;  %v1964_v46 = vpop.permute.xlu1 %482 }
  0xce   : > { %v458_v47 = vpop.permute.xlu0 %457  ;;  %v463_v48 = vpop.permute.xlu1 %462 }
  0xd2   : > { %v1966_v49 = vpop.permute.xlu0 %487  ;;  %v1968_v50 = vpop.permute.xlu1 %492 }
  0xd6   : > { %v1970_v55 = vpop.permute.xlu0 %497  ;;  %v1972_v60 = vpop.permute.xlu1 %502 }
  0xda   : > { %v1976_v2 = vpop.permute.xlu0 %517  ;;  %v1985_v12 = vpop.permute.xlu1 %522 }
  0xf4   : > { %v729_v51 = vpop.f32.mrb[0].mxu0  ;;  %v855_v52 = vpop.f32.mrb[0].mxu1 }
  0xf5   : > { %v731_v53 = vpop.f32.mrb[1].mxu0  ;;  %v857_v54 = vpop.f32.mrb[1].mxu1  ;;  %v1978_v5 = vadd.f32 %v729_v51, %v338_v26 }
  0xf6   : > { %v1980_v9 = vadd.f32 %v731_v53, %v338_v26 }
  0xf8   : > { %v735_v56 = vpop.f32.mrb[2].mxu0  ;;  %v861_v57 = vpop.f32.mrb[2].mxu1 }
  0xf9   : > { %v737_v58 = vpop.f32.mrb[3].mxu0  ;;  %v863_v59 = vpop.f32.mrb[3].mxu1  ;;  %v1990_v16 = vadd.f32 %v735_v56, %v343_v27 }
  0xfa   : > { %v1992_v20 = vadd.f32 %v737_v58, %v343_v27  ;;  %v858_v58 = vadd.f32 %v857_v54, %v443_v36 }
  0xfc   : > { %v741_v61 = vpop.f32.mrb[4].mxu0  ;;  %v867_v62 = vpop.f32.mrb[4].mxu1 }
  0xfd   : > { %v743_v63 = vpop.f32.mrb[5].mxu0  ;;  %v1974_v1 = vpop.f32.mrb[5].mxu1 }
 0x100   : > { %v747_v3 = vpop.f32.mrb[6].mxu0  ;;  %v873_v4 = vpop.f32.mrb[6].mxu1 }
 0x101   : > { %v874_v6 = vadd.f32 %v873_v4, %v458_v47  ;;  %v749_v7 = vpop.f32.mrb[7].mxu0  ;;  %v875_v8 = vpop.f32.mrb[7].mxu1 }
 0x102   : > { %v876_v10 = vadd.f32 %v875_v8, %v458_v47  ;;  %v468_v47 = vpop.permute.xlu0 %467  ;;  %v2000_v8 = vadd.f32 %v741_v61, %v348_v37  ;;  %v473_v61 = vpop.permute.xlu1 %472 }
 0x103   : > { %v1983_v11 = vmul.f32 %v874_v6, %v1978_v5  ;;  %v856_v6 = vadd.f32 %v855_v52, %v443_v36 }
 0x104   : > { %v1988_v13 = vmul.f32 %v876_v10, %v1980_v9  ;;  %v753_v14 = vpop.f32.mrb[8].mxu0  ;;  %v879_v15 = vpop.f32.mrb[8].mxu1 }
 0x105   : > { %v880_v17 = vadd.f32 %v879_v15, %v463_v48  ;;  %v755_v18 = vpop.f32.mrb[9].mxu0  ;;  %v881_v19 = vpop.f32.mrb[9].mxu1 }
 0x106   : > { %v882_v21 = vadd.f32 %v881_v19, %v463_v48  ;;  %v2005_v48 = vadd.f32 %v743_v63, %v348_v37  ;;  %v862_v37 = vadd.f32 %v861_v57, %v1958_v43 }
 0x107   : > { %v1995_v26 = vmul.f32 %v880_v17, %v1990_v16 }
 0x108   : > { %v1998_v51 = vmul.f32 %v882_v21, %v1992_v20  ;;  %v759_v53 = vpop.f32.mrb[10].mxu0  ;;  %v885_v4 = vpop.f32.mrb[10].mxu1 }
 0x109   : > { %v2003_v56 = vadd.f32 %v759_v53, %v1926_v24  ;;  %v886_v10 = vadd.f32 %v885_v4, %v468_v47  ;;  %v761_v15 = vpop.f32.mrb[11].mxu0  ;;  %v887_v27 = vpop.f32.mrb[11].mxu1 }
 0x10a   : > { %v2008_v17 = vadd.f32 %v761_v15, %v1926_v24  ;;  %v888_v19 = vadd.f32 %v887_v27, %v468_v47  ;;  %v2024_v24 = vadd.f32 %v747_v3, %v1948_v38  ;;  %v2031_v15 = vadd.f32 %v749_v7, %v1948_v38 }
 0x10b   : > { %v2011_v21 = vmul.f32 %v856_v6, %v2003_v56  ;;  %v2014_v52 = vmul.f32 %v886_v10, %v2000_v8  ;;  %v864_v10 = vadd.f32 %v863_v59, %v1958_v43  ;;  %v868_v38 = vadd.f32 %v867_v62, %v1960_v44 }
 0x10c   : > { %v2017_v53 = vmul.f32 %v888_v19, %v2005_v48  ;;  %v765_v4 = vpop.f32.mrb[12].mxu0  ;;  %v891_v35 = vpop.f32.mrb[12].mxu1  ;;  %v2020_v36 = vmul.f32 %v858_v58, %v2008_v17 }
 0x10d   : > { %v2027_v54 = vadd.f32 %v765_v4, %v1934_v29  ;;  %v892_v63 = vadd.f32 %v891_v35, %v473_v61  ;;  %v767_v47 = vpop.f32.mrb[13].mxu0  ;;  %v893_v6 = vpop.f32.mrb[13].mxu1 }
 0x10e   : > { %v2034_v27 = vadd.f32 %v767_v47, %v1934_v29  ;;  %v894_v58 = vadd.f32 %v893_v6, %v473_v61  ;;  %v2050_v29 = vadd.f32 %v753_v14, %v1922_v22  ;;  %v2059_v47 = vadd.f32 %v755_v18, %v1922_v22 }
 0x10f   : > { %v2037_v57 = vmul.f32 %v862_v37, %v2027_v54  ;;  %v2040_v3 = vmul.f32 %v892_v63, %v2024_v24  ;;  %v870_v63 = vadd.f32 %v1974_v1, %v1960_v44 }
 0x110   : > { %v2043_v19 = vmul.f32 %v894_v58, %v2031_v15  ;;  %v771_v35 = vpop.f32.mrb[14].mxu0  ;;  %v897_v4 = vpop.f32.mrb[14].mxu1  ;;  %v2046_v43 = vmul.f32 %v864_v10, %v2034_v27 }
 0x111   : > { %v2053_v59 = vadd.f32 %v771_v35, %v1936_v30  ;;  %v898_v7 = vadd.f32 %v897_v4, %v1962_v45  ;;  %v773_v61 = vpop.f32.mrb[15].mxu0  ;;  %v899_v37 = vpop.f32.mrb[15].mxu1 }
 0x112   : > { %2333 = vst [vmem:[#allocation6_spill] sm:$0xff] %v2046_v43  ;;  %v2062_v6 = vadd.f32 %v773_v61, %v1936_v30  ;;  %v900_v62 = vadd.f32 %v899_v37, %v1962_v45 }
 0x113   : > { %v2066_v14 = vmul.f32 %v868_v38, %v2053_v59  ;;  %v1048_v10 = vmul.f32 %v898_v7, %v2050_v29 }
 0x114   : > { %v1049_v58 = vmul.f32 %v900_v62, %v2059_v47  ;;  %v777_v35 = vpop.f32.mrb[16].mxu0  ;;  %v903_v4 = vpop.f32.mrb[16].mxu1  ;;  %v2071_v43 = vmul.f32 %v870_v63, %v2062_v6 }
 0x115   : > { %2334 = vst [vmem:[#allocation7_spill] sm:$0xff] %v2066_v14  ;;  %v1056_v44 = vadd.f32 1.0, %v1048_v10  ;;  %v778_v22 = vadd.f32 %v777_v35, %v1930_v28  ;;  %v904_v30 = vadd.f32 %v903_v4, %v1964_v46  ;;  %v779_v1 = vpop.f32.mrb[17].mxu0  ;;  %v905_v18 = vpop.f32.mrb[17].mxu1 }
 0x116   : > { %2335 = vst [vmem:[#allocation8_spill] sm:$0xff] %v2071_v43  ;;  %v1057_v45 = vadd.f32 1.0, %v1049_v58  ;;  %v780_v38 = vadd.f32 %v779_v1, %v1930_v28  ;;  %v906_v61 = vadd.f32 %v905_v18, %v1964_v46 }
 0x117   : > { %v1064_v7 = vmul.f32 %v1056_v44, %v1983_v11  ;;  %v2079_v37 = vmul.f32 %v778_v22, %v1978_v5  ;;  %v1050_v63 = vmul.f32 %v904_v30, %v2003_v56 }
 0x118   : > { %v1065_v62 = vmul.f32 %v1057_v45, %v1988_v13  ;;  %v2084_v10 = vmul.f32 %v780_v38, %v1980_v9  ;;  %v1051_v35 = vmul.f32 %v906_v61, %v2008_v17  ;;  %v783_v4 = vpop.f32.mrb[18].mxu0  ;;  %v909_v58 = vpop.f32.mrb[18].mxu1 }
 0x119   : > { %v1058_v43 = vadd.f32 1.0, %v1050_v63  ;;  %v784_v28 = vadd.f32 %v783_v4, %v1932_v0  ;;  %v910_v46 = vadd.f32 %v909_v58, %v1966_v49  ;;  %v785_v11 = vpop.f32.mrb[19].mxu0  ;;  %v911_v44 = vpop.f32.mrb[19].mxu1 }
 0x11a   : > { %v1059_v22 = vadd.f32 1.0, %v1051_v35  ;;  %v786_v1 = vadd.f32 %v785_v11, %v1932_v0  ;;  %v912_v30 = vadd.f32 %v911_v44, %v1966_v49 }
 0x11b   : > { %v1066_v13 = vmul.f32 %v1058_v43, %v1995_v26  ;;  %v2093_v18 = vmul.f32 %v784_v28, %v1990_v16  ;;  %v1052_v45 = vmul.f32 %v910_v46, %v2027_v54 }
 0x11c   : > { %v1067_v38 = vmul.f32 %v1059_v22, %v1998_v51  ;;  %v2098_v61 = vmul.f32 %v786_v1, %v1992_v20  ;;  %v1053_v63 = vmul.f32 %v912_v30, %v2034_v27  ;;  %v789_v4 = vpop.f32.mrb[20].mxu0  ;;  %v915_v35 = vpop.f32.mrb[20].mxu1 }
 0x11d   : > { %v1060_v58 = vadd.f32 1.0, %v1052_v45  ;;  %v790_v0 = vadd.f32 %v789_v4, %v1950_v39  ;;  %v916_v49 = vadd.f32 %v915_v35, %v1968_v50  ;;  %v791_v26 = vpop.f32.mrb[21].mxu0  ;;  %v917_v43 = vpop.f32.mrb[21].mxu1 }
 0x11e   : > { %v1061_v28 = vadd.f32 1.0, %v1053_v63  ;;  %v792_v11 = vadd.f32 %v791_v26, %v1950_v39  ;;  %v918_v46 = vadd.f32 %v917_v43, %v1968_v50 }
 0x11f   : > { %v1068_v51 = vmul.f32 %v1060_v58, %v2014_v52  ;;  %v2107_v44 = vmul.f32 %v790_v0, %v2000_v8  ;;  %v1054_v22 = vmul.f32 %v916_v49, %v2053_v59 }
 0x120   : > { %v1069_v1 = vmul.f32 %v1061_v28, %v2017_v53  ;;  %v2112_v30 = vmul.f32 %v792_v11, %v2005_v48  ;;  %v1055_v45 = vmul.f32 %v918_v46, %v2062_v6  ;;  %v795_v4 = vpop.f32.mrb[22].mxu0  ;;  %v921_v63 = vpop.f32.mrb[22].mxu1 }
 0x121   : > { %v1062_v35 = vadd.f32 1.0, %v1054_v22  ;;  %v796_v39 = vadd.f32 %v795_v4, %v1952_v40  ;;  %v922_v50 = vadd.f32 %v921_v63, %v1970_v55  ;;  %v797_v52 = vpop.f32.mrb[23].mxu0  ;;  %v923_v58 = vpop.f32.mrb[23].mxu1 }
 0x122   : > { %v1063_v0 = vadd.f32 1.0, %v1055_v45  ;;  %v798_v26 = vadd.f32 %v797_v52, %v1952_v40  ;;  %v924_v49 = vadd.f32 %v923_v58, %v1970_v55  ;;  %v508_v52 = vpop.permute.xlu0 %507 }
 0x123   : > { %v1070_v53 = vmul.f32 %v1062_v35, %v2040_v3  ;;  %v2121_v43 = vmul.f32 %v796_v39, %v2024_v24  ;;  %v1072_v28 = vmul.f32 %v922_v50, %v1978_v5 }
 0x124   : > { %v2125_v11 = vmul.f32 %v1063_v0, %v2043_v19  ;;  %v2128_v46 = vmul.f32 %v798_v26, %v2031_v15  ;;  %v1073_v22 = vmul.f32 %v924_v49, %v1980_v9  ;;  %v801_v45 = vpop.f32.mrb[24].mxu0  ;;  %v927_v4 = vpop.f32.mrb[24].mxu1 }
 0x125   : > { %v2131_v40 = vadd.f32 %v1072_v28, %v1064_v7  ;;  %v802_v55 = vadd.f32 %v801_v45, %v1924_v23  ;;  %v928_v3 = vadd.f32 %v927_v4, %v1972_v60  ;;  %v803_v63 = vpop.f32.mrb[25].mxu0  ;;  %v929_v35 = vpop.f32.mrb[25].mxu1 }
 0x126   : > { %v2135_v39 = vadd.f32 %v1073_v22, %v1065_v62  ;;  %v804_v19 = vadd.f32 %v803_v63, %v1924_v23  ;;  %v930_v50 = vadd.f32 %v929_v35, %v1972_v60 }
 0x127   : > { %v976_v58 = vmul.f32 %v802_v55, %v2050_v29  ;;  %v1074_v0 = vmul.f32 %v928_v3, %v1990_v16 }
 0x128   : > { %v977_v7 = vmul.f32 %v804_v19, %v2059_v47  ;;  %v1075_v26 = vmul.f32 %v930_v50, %v1992_v20  ;;  %v807_v49 = vpop.f32.mrb[26].mxu0  ;;  %v933_v28 = vpop.f32.mrb[26].mxu1 }
 0x129   : > { %v984_v45 = vadd.f32 1.0, %v976_v58  ;;  %v2143_v4 = vadd.f32 %v1074_v0, %v1066_v13  ;;  %v808_v62 = vadd.f32 %v807_v49, %v1928_v25  ;;  %v934_v22 = vadd.f32 %v933_v28, %v508_v52  ;;  %v809_v23 = vpop.f32.mrb[27].mxu0  ;;  %v935_v63 = vpop.f32.mrb[27].mxu1 }
 0x12a   : > { %v985_v60 = vadd.f32 1.0, %v977_v7  ;;  %v2146_v35 = vadd.f32 %v1075_v26, %v1067_v38  ;;  %v810_v55 = vadd.f32 %v809_v23, %v1928_v25  ;;  %v936_v3 = vadd.f32 %v935_v63, %v508_v52  ;;  %v513_v50 = vpop.permute.xlu1 %512 }
 0x12b   : > { %v2150_v19 = vmul.f32 %v984_v45, %v2079_v37  ;;  %v978_v14 = vmul.f32 %v808_v62, %v2003_v56  ;;  %v1076_v13 = vmul.f32 %v934_v22, %v2000_v8 }
 0x12c   : > { %v2155_v58 = vmul.f32 %v985_v60, %v2084_v10  ;;  %v979_v0 = vmul.f32 %v810_v55, %v2008_v17  ;;  %v1077_v7 = vmul.f32 %v936_v3, %v2005_v48  ;;  %v813_v38 = vpop.f32.mrb[28].mxu0  ;;  %v939_v26 = vpop.f32.mrb[28].mxu1 }
 0x12d   : > { %v986_v49 = vadd.f32 1.0, %v978_v14  ;;  %v2159_v25 = vadd.f32 %v1076_v13, %v1068_v51  ;;  %v814_v37 = vadd.f32 %v813_v38, %v1938_v31  ;;  %v940_v52 = vadd.f32 %v939_v26, %v513_v50  ;;  %v815_v28 = vpop.f32.mrb[29].mxu0  ;;  %v941_v45 = vpop.f32.mrb[29].mxu1 }
 0x12e   : > { %v987_v62 = vadd.f32 1.0, %v979_v0  ;;  %v2162_v23 = vadd.f32 %v1077_v7, %v1069_v1  ;;  %v816_v10 = vadd.f32 %v815_v28, %v1938_v31  ;;  %v942_v22 = vadd.f32 %v941_v45, %v513_v50 }
 0x12f   : > { %v2166_v63 = vmul.f32 %v986_v49, %v2093_v18  ;;  %v980_v60 = vmul.f32 %v814_v37, %v2027_v54  ;;  %v1078_v14 = vmul.f32 %v940_v52, %v2024_v24 }
 0x130   : > { %v2171_v51 = vmul.f32 %v987_v62, %v2098_v61  ;;  %v981_v55 = vmul.f32 %v816_v10, %v2034_v27  ;;  %v1079_v3 = vmul.f32 %v942_v22, %v2031_v15  ;;  %v819_v13 = vpop.f32.mrb[30].mxu0  ;;  %v945_v1 = vpop.f32.mrb[30].mxu1 }
 0x131   : > { %v988_v0 = vadd.f32 1.0, %v980_v60  ;;  %v2175_v7 = vadd.f32 %v1078_v14, %v1070_v53  ;;  %v820_v31 = vadd.f32 %v819_v13, %v1940_v32  ;;  %v946_v18 = vadd.f32 %v945_v1, %v1976_v2  ;;  %v821_v50 = vpop.f32.mrb[31].mxu0  ;;  %v947_v38 = vpop.f32.mrb[31].mxu1 }
 0x132   : > { %v989_v26 = vadd.f32 1.0, %v981_v55  ;;  %v2180_v49 = vadd.f32 %v1079_v3, %v2125_v11  ;;  %v822_v61 = vadd.f32 %v821_v50, %v1940_v32  ;;  %v948_v37 = vadd.f32 %v947_v38, %v1976_v2 }
 0x133   : > { %v2185_v52 = vmul.f32 %v988_v0, %v2107_v44  ;;  %v982_v53 = vmul.f32 %v820_v31, %v2053_v59  ;;  %v1088_v28 = vmul.f32 %v946_v18, %v2050_v29  ;;  %v1026_v32 = vadd.f32 1.0, %v2011_v21  ;;  %v528_v31 = vpop.permute.xlu0 %527 }
 0x134   : > { %v2190_v45 = vmul.f32 %v989_v26, %v2112_v30  ;;  %v983_v62 = vmul.f32 %v822_v61, %v2062_v6  ;;  %v1089_v10 = vmul.f32 %v948_v37, %v2059_v47  ;;  %v825_v11 = vpop.f32.mrb[32].mxu0  ;;  %v951_v22 = vpop.f32.mrb[32].mxu1 }
 0x135   : > { %v990_v60 = vadd.f32 1.0, %v982_v53  ;;  %v1096_v2 = vadd.f32 1.0, %v1088_v28  ;;  %v826_v44 = vadd.f32 %v825_v11, %v1942_v33  ;;  %v952_v14 = vadd.f32 %v951_v22, %v1985_v12  ;;  %v827_v55 = vpop.f32.mrb[33].mxu0  ;;  %v953_v3 = vpop.f32.mrb[33].mxu1 }
 0x136   : > { %v991_v13 = vadd.f32 1.0, %v983_v62  ;;  %v1097_v1 = vadd.f32 1.0, %v1089_v10  ;;  %v828_v30 = vadd.f32 %v827_v55, %v1942_v33  ;;  %v954_v0 = vadd.f32 %v953_v3, %v1985_v12  ;;  %v533_v11 = vpop.permute.xlu1 %532 }
 0x137   : > { %v2200_v18 = vmul.f32 %v990_v60, %v2121_v43  ;;  %v2203_v21 = vmul.f32 %v1096_v2, %v2131_v40  ;;  %v1000_v50 = vmul.f32 %v826_v44, %v1978_v5  ;;  %v1090_v38 = vmul.f32 %v952_v14, %v2003_v56 }
 0x138   : > { %v2208_v26 = vmul.f32 %v991_v13, %v2128_v46  ;;  %v2211_v61 = vmul.f32 %v1097_v1, %v2135_v39  ;;  %v1001_v33 = vmul.f32 %v828_v30, %v1980_v9  ;;  %v1091_v12 = vmul.f32 %v954_v0, %v2008_v17  ;;  %v831_v37 = vpop.f32.mrb[34].mxu0  ;;  %v957_v43 = vpop.f32.mrb[34].mxu1 }
 0x139   : > { %v2216_v53 = vadd.f32 %v1000_v50, %v2150_v19  ;;  %v1098_v40 = vadd.f32 1.0, %v1090_v38  ;;  %v832_v5 = vadd.f32 %v831_v37, %v1944_v34  ;;  %v958_v28 = vadd.f32 %v957_v43, %v528_v31  ;;  %v833_v56 = vpop.f32.mrb[35].mxu0  ;;  %v959_v62 = vpop.f32.mrb[35].mxu1 }
 0x13a   : > { %v2220_v46 = vadd.f32 %v1001_v33, %v2155_v58  ;;  %v1099_v39 = vadd.f32 1.0, %v1091_v12  ;;  %v834_v10 = vadd.f32 %v833_v56, %v1944_v34  ;;  %v960_v9 = vadd.f32 %v959_v62, %v528_v31 }
 0x13b   : > { %v2224_v17 = vmul.f32 %v1098_v40, %v2143_v4  ;;  %v1002_v19 = vmul.f32 %v832_v5, %v1990_v16  ;;  %v1092_v22 = vmul.f32 %v958_v28, %v2027_v54  ;;  %v1027_v60 = vadd.f32 1.0, %v2020_v36 }
 0x13c   : > { %v2230_v2 = vmul.f32 %v1099_v39, %v2146_v35  ;;  %v1003_v58 = vmul.f32 %v834_v10, %v1992_v20  ;;  %v1093_v44 = vmul.f32 %v960_v9, %v2034_v27  ;;  %v837_v14 = vpop.f32.mrb[36].mxu0  ;;  %v1028_v34 = vadd.f32 1.0, %v2037_v57  ;;  %v963_v55 = vpop.f32.mrb[36].mxu1  ;;  %v2337_v39 = vld [vmem:[#allocation7_spill] sm:$0xff]  ;;  %v2338_v10 = vld [vmem:[#allocation5_spill] sm:$0xff] }
 0x13d   : > { %v1357_v4 = vpack.c.bf16 %v2224_v17, %v2203_v21  ;;  %v1010_v16 = vadd.f32 %v1002_v19, %v2166_v63  ;;  %v1100_v3 = vadd.f32 1.0, %v1092_v22  ;;  %v838_v54 = vadd.f32 %v837_v14, %v1954_v41  ;;  %v839_v36 = vpop.f32.mrb[37].mxu0  ;;  %v965_v13 = vpop.f32.mrb[37].mxu1  ;;  %v2339_v19 = vld [vmem:[#allocation8_spill] sm:$0xff] }
 0x13e   : > { %v1011_v35 = vadd.f32 %v1003_v58, %v2171_v51  ;;  %v1101_v1 = vadd.f32 1.0, %v1093_v44  ;;  %v964_v20 = vadd.f32 %v963_v55, %v533_v11  ;;  %v840_v27 = vadd.f32 %v839_v36, %v1954_v41 }
 0x13f   : > { %v1034_v30 = vmul.f32 %v1026_v32, %v1010_v16  ;;  %v1108_v57 = vmul.f32 %v1100_v3, %v2159_v25  ;;  %v1004_v0 = vmul.f32 %v838_v54, %v2000_v8  ;;  %v966_v31 = vadd.f32 %v965_v13, %v533_v11 }
 0x140   : > { %v1109_v21 = vmul.f32 %v1101_v1, %v2162_v23  ;;  %v1094_v63 = vmul.f32 %v964_v20, %v2053_v59  ;;  %v1005_v50 = vmul.f32 %v840_v27, %v2005_v48  ;;  %v843_v38 = vpop.f32.mrb[38].mxu0  ;;  %v1035_v33 = vmul.f32 %v1027_v60, %v1011_v35  ;;  %v2336_v59 = vld [vmem:[#allocation6_spill] sm:$0xff] }
 0x141   : > { %v1012_v51 = vadd.f32 %v1004_v0, %v2185_v52  ;;  %v1095_v12 = vmul.f32 %v966_v31, %v2062_v6  ;;  %v844_v41 = vadd.f32 %v843_v38, %v1956_v42  ;;  %v845_v32 = vpop.f32.mrb[39].mxu0  ;;  %v1355_v25 = vpack.c.bf16 %v2230_v2, %v2211_v61 }
 0x142   : > { %v1102_v8 = vadd.f32 1.0, %v1094_v63  ;;  %v1013_v37 = vadd.f32 %v1005_v50, %v2190_v45  ;;  %v846_v23 = vadd.f32 %v845_v32, %v1956_v42  ;;  %v1029_v43 = vadd.f32 1.0, %v2336_v59 }
 0x143   : > { %v1036_v48 = vmul.f32 %v1028_v34, %v1012_v51  ;;  %v1103_v40 = vadd.f32 1.0, %v1095_v12  ;;  %v1006_v5 = vmul.f32 %v844_v41, %v2024_v24  ;;  %v1030_v45 = vadd.f32 1.0, %v2337_v39 }
 0x144   : > { %v1110_v52 = vmul.f32 %v1102_v8, %v2175_v7  ;;  %v1007_v6 = vmul.f32 %v846_v23, %v2031_v15  ;;  %v849_v28 = vpop.f32.mrb[40].mxu0  ;;  %v1037_v56 = vmul.f32 %v1029_v43, %v1013_v37  ;;  %v1031_v7 = vadd.f32 1.0, %v2339_v19 }
 0x145   : > { %v1111_v62 = vmul.f32 %v1103_v40, %v2180_v49  ;;  %v1014_v61 = vadd.f32 %v1006_v5, %v2200_v18  ;;  %v850_v42 = vadd.f32 %v849_v28, %v2338_v10  ;;  %v851_v9 = vpop.f32.mrb[41].mxu0 }
 0x146   : > { %v1361_v11 = vpack.c.bf16 %v1110_v52, %v1108_v57  ;;  %v1015_v17 = vadd.f32 %v1007_v6, %v2208_v26  ;;  %v852_v24 = vadd.f32 %v851_v9, %v2338_v10 }
 0x147   : > { %v1038_v22 = vmul.f32 %v1030_v45, %v1014_v61  ;;  %v1016_v15 = vmul.f32 %v850_v42, %v2050_v29  ;;  %v1359_v60 = vpack.c.bf16 %v1111_v62, %v1109_v21  ;;  %v1112_v29 = vld [vmem:[%s2326_s3] sm:$0xff] }
 0x148   : > { %v1017_v49 = vmul.f32 %v852_v24, %v2059_v47  ;;  %v1039_v2 = vmul.f32 %v1031_v7, %v1015_v17  ;;  %v1117_v47 = vpop.permute.xlu0 %1116 }
 0x149   : > { %v1024_v18 = vadd.f32 1.0, %v1016_v15  ;;  %v1353_v58 = vpack.c.bf16 %v1038_v22, %v1036_v48 }
 0x14a   : > { %v1025_v44 = vadd.f32 1.0, %v1017_v49  ;;  %v1351_v14 = vpack.c.bf16 %v1039_v2, %v1037_v56 }
 0x14b   : > { %v1032_v34 = vmul.f32 %v1024_v18, %v2216_v53 }
 0x14c   : > { %v1033_v26 = vmul.f32 %v1025_v44, %v2220_v46 }
 0x14d   : > { %v1349_v55 = vpack.c.bf16 %v1034_v30, %v1032_v34 }
 0x14e   : > { %v1347_v16 = vpack.c.bf16 %v1035_v33, %v1033_v26 }
 0x150   : > { %1348 = vmatprep.subr.bf16.mxu1 %v1347_v16 }
 0x151   : > { %1350 = vmatpush1.bf16.msra.mxu1 %v1349_v55 }
 0x152   : > { %1352 = vmatprep.subr.bf16.mxu1 %v1351_v14 }
 0x155   : > { %1354 = vmatpush1.bf16.msra.mxu1 %v1353_v58 }
 0x156   : > { %1356 = vmatprep.subr.bf16.mxu1 %v1355_v25 }
 0x159   : > { %1358 = vmatpush1.bf16.msra.mxu1 %v1357_v4 }
 0x15a   : > { %1360 = vmatprep.subr.bf16.mxu1 %v1359_v60 }
 0x15d   : > { %1362 = vmatpush1.bf16.msra.mxu1 %v1361_v11 }
 0x160   : > { %1339 = vmatmul.mubr.msk.f32.vlgmr.msra.gmra.mrb[38].mxu1 %vm1119_vm2, %v1112_v29 }
 0x233   : > { %v1189_v53 = vpop.f32.mrb[38].mxu1 }
 0x234   : > { %v1190_v46 = vadd.f32 %v1189_v53, %v1117_v47  ;;  %v1191_v3 = vpop.f32.mrb[39].mxu1 }
 0x235   : > { %v1192_v54 = vadd.f32 %v1191_v3, %v1117_v47 }
 0x236   : > { %1194 = vst [vmem:[%s242_s14] sm:$0xff] %v1190_v46 }
 0x237   : > { %1195 = vst [vmem:[%s242_s14 + $0x8] sm:$0xff] %v1192_v54 }
 0x238   : > { %1438 = shalt.err (!%p1435_p5)
}
 0x239   : > { %s1439_s8 = scalar_lea.hbm %s2276_s24, 256  ;;  %s1443_s11 = scalar_lea.hbm %s2328_s5, 512 }
 0x23a   : > { %p1440_p6 = scmp.ne.s32.totalorder %s2276_s24, %s1439_s8  ;;  %p1444_p10 = scmp.lt.u32.totalorder %s2276_s24, %s2328_s5 }
 0x23b   : > { %p1445_p11 = scmp.lt.u32.totalorder %s1443_s11, %s1439_s8  ;;  %p1447_p13 = scmp.lt.u32.totalorder %s1439_s8, %s2276_s24 }
 0x23c   : > { %p1441_p7 = pnand %p1440_p6, %p1578_p4 }
 0x23d   : > { %p1446_p12 = por %p1445_p11, %p1444_p10 }
 0x23e   : > { %p1442_p9 = pneg %p1441_p7 }
 0x23f   : > { %p1448_p0 = por %p1447_p13, %p1446_p12 }
 0x241   : > { %p1449_p1 = pnand %p1448_p0, %p1442_p9 }
 0x243   : > { %1452 = shalt.err (!%p1449_p1)
}
 0x244   : > { %1365 = dma.vmem_to_hbm [thread:$0]  (%p1578_p4), %s2278_s15, 256, %s2276_s24, %s1197_s21  }
 0x245 PF: > { %p1371_p2 = scmp.ge.s32.totalorder %s1503_s23, 2  ;;  %s1225_s14 = sand.u32 1, %s1483_s18  }
 0x246   : > { %s1226_s16 = scalar_lea.sflag [#allocation3], %s1225_s14 }
 0x247   : > { %p1368_p3 = pnand %p1371_p2, %p1585_p8 }
 0x249   : > { %1478 = dma.done.wait (!%p1368_p3), %s1226_s16, 256  }
 0x24a   : > { %1480 = vsyncadd (!%p1368_p3), %s1226_s16, 4294967040  ;;  %s18_s23 = sadd.s32 1, %s1503_s23   ;;  %s2340_s18 = smov %s1487_s19 }
 0x24b   : > { %p15_p5 = scmp.ge.s32.totalorder %s18_s23, 4   ;;  %s2341_s19 = smov %s1491_s20 }
 0x24c   : > { %s2342_s20 = smov %s1591_s6  ;;  %s2343_s21 = smov %s1499_s22 }
 0x24d   : > { %s2344_s22 = smov %s2346_s26  ;;  %17 = sbr.rel (!%p15_p5) target bundleno = 4 (0x4), region = 75 }
 0x254   :  { %1231 = vsyncpa [#allocation3], 1 }
 0x255   :  { %1233 = vsyncpa [#allocation3 + $0x1], 1 }

</bundles_post_ra>
